<compile_context>
chip_gen: v5e
topology: v5e:2x2
jax: 0.10.0
libtpu: 0.0.40
codegen_flags: <defaults>
</compile_context>

<pallas_src>
import math
import functools

import jax
import jax.numpy as jnp
from jax import lax
from jax.experimental import pallas as pl
from jax.experimental.pallas import tpu as pltpu


def _gelu_tanh(x):
    c = math.sqrt(2.0 / math.pi)
    return 0.5 * x * (1.0 + jnp.tanh(c * (x + 0.044715 * x * x * x)))


# --------------------------------------------------------------------------- #
# CNN block kernel: conv1d(k=3,'same') + folded BatchNorm + GELU + AvgPool1d(2)
# --------------------------------------------------------------------------- #
def conv_block_kernel(x_ref, w3_ref, b_ref, scale_ref, shift_ref, o_ref):
    x = x_ref[0]                                      # (T, Cin) f32
    T, Cin = x.shape
    # 'same' halo built in VMEM (no padded HBM copy)
    zero = jnp.zeros((1, Cin), jnp.float32)
    xp = jnp.concatenate([zero, x, zero], axis=0)     # (T+2, Cin)
    # fuse the 3 taps into one matmul: K = 3*Cin instead of 3 matmuls with K=Cin
    x3 = jnp.concatenate(
        [xp[0:T, :], xp[1:T + 1, :], xp[2:T + 2, :]], axis=-1
    ).astype(jnp.bfloat16)                            # (T, 3*Cin), tap-major
    y = (jnp.dot(x3, w3_ref[...], preferred_element_type=jnp.float32)
         + b_ref[...])                                # (T, Cout) f32
    y = y * scale_ref[...] + shift_ref[...]           # BatchNorm1d (eval), folded
    y = _gelu_tanh(y)
    Cout = y.shape[-1]
    # AvgPool1d(2): cheap VPU reshape+mean (was an O(T^2) pooling matmul)
    o_ref[0] = jnp.mean(y.reshape(T // 2, 2, Cout), axis=1)


def conv_block(x, w3, b, scale, shift):
    B, T, Cin = x.shape
    assert T % 2 == 0, "AvgPool1d(2) path assumes even T at every CNN stage"
    Cout = w3.shape[-1]
    return pl.pallas_call(
        conv_block_kernel,
        out_shape=jax.ShapeDtypeStruct((B, T // 2, Cout), jnp.float32),
        grid=(B,),
        in_specs=[
            pl.BlockSpec((1, T, Cin), lambda b_: (b_, 0, 0)),
            pl.BlockSpec((3 * Cin, Cout), lambda b_: (0, 0)),
            pl.BlockSpec((1, Cout), lambda b_: (0, 0)),
            pl.BlockSpec((1, Cout), lambda b_: (0, 0)),
            pl.BlockSpec((1, Cout), lambda b_: (0, 0)),
        ],
        out_specs=pl.BlockSpec((1, T // 2, Cout), lambda b_: (b_, 0, 0)),
        compiler_params=pltpu.CompilerParams(dimension_semantics=("parallel",)),
    )(x, w3, b, scale, shift)


# --------------------------------------------------------------------------- #
# Head kernel: 1x1 Conv1d == per-timestep matmul over channels (bf16 MXU)
# --------------------------------------------------------------------------- #
def head_kernel(x_ref, w_ref, b_ref, o_ref):
    o_ref[0] = (jnp.dot(x_ref[0].astype(jnp.bfloat16), w_ref[...],
                        preferred_element_type=jnp.float32) + b_ref[...])


def conv_head(x, w, b):
    B, T, C = x.shape
    D = w.shape[-1]
    return pl.pallas_call(
        head_kernel,
        out_shape=jax.ShapeDtypeStruct((B, T, D), jnp.float32),
        grid=(B,),
        in_specs=[
            pl.BlockSpec((1, T, C), lambda b_: (b_, 0, 0)),
            pl.BlockSpec((C, D), lambda b_: (0, 0)),
            pl.BlockSpec((1, D), lambda b_: (0, 0)),
        ],
        out_specs=pl.BlockSpec((1, T, D), lambda b_: (b_, 0, 0)),
        compiler_params=pltpu.CompilerParams(dimension_semantics=("parallel",)),
    )(x, w, b)


# --------------------------------------------------------------------------- #
# Fused transformer stack: ALL pre-LN encoder layers in ONE pallas_call.
# grid = (B, n_layers); x stays resident in VMEM scratch across the layer axis,
# per-layer weights stream in via the layer grid index (auto-prefetched).
# --------------------------------------------------------------------------- #
def tx_stack_kernel(x_ref,
                    ln1w_ref, ln1b_ref,
                    wq_ref, wk_ref, wv_ref,
                    bq_ref, bk_ref, bv_ref,
                    wo_ref, bo_ref,
                    ln2w_ref, ln2b_ref,
                    w1_ref, b1_ref, w2_ref, b2_ref,
                    o_ref, xacc_ref, *, n_heads):
    l = pl.program_id(1)

    @pl.when(l == 0)
    def _():
        xacc_ref[...] = x_ref[0]

    x = xacc_ref[...]                                 # (T, D) f32, resident
    T, D = x.shape
    H = n_heads
    dh = D // H
    scale = 1.0 / math.sqrt(dh)

    def layer_norm(v, w, b):
        mu = jnp.mean(v, axis=-1, keepdims=True)
        var = jnp.mean((v - mu) ** 2, axis=-1, keepdims=True)
        return (v - mu) * lax.rsqrt(var + 1e-5) * w + b

    # ---- self-attention sub-block (norm_first), all heads batched ----
    xn = layer_norm(x, ln1w_ref[0], ln1b_ref[0])                       # (T, D) f32
    xh = jnp.broadcast_to(xn.astype(jnp.bfloat16)[None], (H, T, D))    # (H, T, D)
    q = jnp.einsum('htd,hdc->htc', xh, wq_ref[0],
                   preferred_element_type=jnp.float32) + bq_ref[0]     # (H, T, dh)
    k = jnp.einsum('htd,hdc->htc', xh, wk_ref[0],
                   preferred_element_type=jnp.float32) + bk_ref[0]
    v = jnp.einsum('htd,hdc->htc', xh, wv_ref[0],
                   preferred_element_type=jnp.float32) + bv_ref[0]
    s = jnp.einsum('hqc,hkc->hqk', q.astype(jnp.bfloat16), k.astype(jnp.bfloat16),
                   preferred_element_type=jnp.float32) * scale          # (H, T, T)
    s = s - jnp.max(s, axis=-1, keepdims=True)
    p = jnp.exp(s)
    p = p * pl.reciprocal(jnp.sum(p, axis=-1, keepdims=True), approx=True)
    ctx = jnp.einsum('hqk,hkc->hqc', p.astype(jnp.bfloat16), v.astype(jnp.bfloat16),
                     preferred_element_type=jnp.float32)                # (H, T, dh)
    attn = jnp.einsum('htc,hcd->htd', ctx.astype(jnp.bfloat16), wo_ref[0],
                      preferred_element_type=jnp.float32)               # (H, T, D)
    x = x + jnp.sum(attn, axis=0) + bo_ref[0]

    # ---- feed-forward sub-block (pre-LN, ReLU = torch default activation) ----
    xn2 = layer_norm(x, ln2w_ref[0], ln2b_ref[0])
    h1 = jnp.maximum(
        jnp.dot(xn2.astype(jnp.bfloat16), w1_ref[0],
                preferred_element_type=jnp.float32) + b1_ref[0], 0.0)
    x = x + (jnp.dot(h1.astype(jnp.bfloat16), w2_ref[0],
                     preferred_element_type=jnp.float32) + b2_ref[0])

    xacc_ref[...] = x

    @pl.when(l == pl.num_programs(1) - 1)
    def _():
        o_ref[0] = x


def transformer_stack(x, tx, n_heads):
    B, T, D = x.shape
    L = tx["ln1w"].shape[0]
    names = ("ln1w", "ln1b", "wq", "wk", "wv", "bq", "bk", "bv",
             "wo", "bo", "ln2w", "ln2b", "w1", "b1", "w2", "b2")
    weights = [tx[n] for n in names]

    def wspec(arr):
        nd = arr.ndim
        return pl.BlockSpec((1,) + tuple(arr.shape[1:]),
                            lambda b, l, _nd=nd: (l,) + (0,) * (_nd - 1))

    kernel = functools.partial(tx_stack_kernel, n_heads=n_heads)
    return pl.pallas_call(
        kernel,
        out_shape=jax.ShapeDtypeStruct((B, T, D), jnp.float32),
        grid=(B, L),
        in_specs=[pl.BlockSpec((1, T, D), lambda b, l: (b, 0, 0))]
                 + [wspec(w) for w in weights],
        out_specs=pl.BlockSpec((1, T, D), lambda b, l: (b, 0, 0)),
        scratch_shapes=[pltpu.VMEM((T, D), jnp.float32)],
        compiler_params=pltpu.CompilerParams(
            dimension_semantics=("parallel", "arbitrary")),
    )(x, *weights)


# --------------------------------------------------------------------------- #
# Glue: positional encoding, parameter init, full forward
# --------------------------------------------------------------------------- #
def sinusoidal_pe(T, D):
    pos = jnp.arange(T, dtype=jnp.float32)[:, None]
    i = jnp.arange(0, D, 2, dtype=jnp.float32)
    div = jnp.exp(-math.log(10000.0) * i / D)
    pe = jnp.zeros((T, D), jnp.float32)
    pe = pe.at[:, 0::2].set(jnp.sin(pos * div))
    pe = pe.at[:, 1::2].set(jnp.cos(pos * div))
    return pe


def init_params(key, cfg):
    d = cfg["d_model"]
    C = cfg["n_enc_channels"]
    n_mels = cfg["n_mels"]
    H = cfg["n_heads"]
    L = cfg["n_layers"]
    dh = d // H
    keys = iter(jax.random.split(key, 1024))

    def nrm(shape, std=0.02):
        return std * jax.random.normal(next(keys), shape, dtype=jnp.float32)

    cnn_blocks = []
    cin = n_mels
    for _ in range(cfg["n_enc_blocks"]):
        w = nrm((3, cin, C), std=0.1)                      # (k, Cin, Cout)
        b = nrm((1, C))
        gamma = 1.0 + nrm((1, C), std=0.05)
        beta = nrm((1, C), std=0.05)
        r_mean = nrm((1, C), std=0.05)
        r_var = 1.0 + jnp.abs(nrm((1, C), std=0.05))
        scale = gamma / jnp.sqrt(r_var + 1e-5)             # fold BN (eval)
        shift = beta - r_mean * scale
        cnn_blocks.append(dict(
            w3=w.reshape(3 * cin, C).astype(jnp.bfloat16),  # fused tap-major weight
            b=b, scale=scale, shift=shift))
        cin = C

    head_w = nrm((C, d)).astype(jnp.bfloat16)
    head_b = jnp.zeros((1, d), jnp.float32)

    def stack_nrm(shape):
        return jnp.stack([nrm(shape) for _ in range(L)], axis=0)

    tx = dict(
        ln1w=jnp.ones((L, 1, d), jnp.float32),
        ln1b=jnp.zeros((L, 1, d), jnp.float32),
        wq=stack_nrm((H, d, dh)).astype(jnp.bfloat16),     # head-major QKV weights
        wk=stack_nrm((H, d, dh)).astype(jnp.bfloat16),
        wv=stack_nrm((H, d, dh)).astype(jnp.bfloat16),
        bq=jnp.zeros((L, H, 1, dh), jnp.float32),
        bk=jnp.zeros((L, H, 1, dh), jnp.float32),
        bv=jnp.zeros((L, H, 1, dh), jnp.float32),
        wo=stack_nrm((H, dh, d)).astype(jnp.bfloat16),     # head-major out-proj
        bo=jnp.zeros((L, 1, d), jnp.float32),
        ln2w=jnp.ones((L, 1, d), jnp.float32),
        ln2b=jnp.zeros((L, 1, d), jnp.float32),
        w1=stack_nrm((d, 4 * d)).astype(jnp.bfloat16),
        b1=jnp.zeros((L, 1, 4 * d), jnp.float32),
        w2=stack_nrm((4 * d, d)).astype(jnp.bfloat16),
        b2=jnp.zeros((L, 1, d), jnp.float32),
    )
    return dict(cnn_blocks=cnn_blocks, head_w=head_w, head_b=head_b, tx=tx)


def audio_encoder_forward(x_ncl, params, cfg):
    # x_ncl: (B, n_mels, T) -- PyTorch NCL.  Returns (x, mask) with mask=None.
    x = jnp.transpose(x_ncl, (0, 2, 1))                    # -> (B, T, n_mels)
    for blk in params["cnn_blocks"]:
        x = conv_block(x, blk["w3"], blk["b"], blk["scale"], blk["shift"])
    x = conv_head(x, params["head_w"], params["head_b"])   # (B, T/2^nb, d_model)
    T_tok, D = x.shape[1], x.shape[2]
    x = x + sinusoidal_pe(T_tok, D)[None]                  # positional encoding
    x = transformer_stack(x, params["tx"], cfg["n_heads"])
    return x, None


if __name__ == "__main__":
    key = jax.random.PRNGKey(0)
    cfg = dict(n_mels=16, d_model=32, n_heads=8, n_layers=2,
               n_enc_channels=32, n_enc_blocks=2)
    B, T = 2, 32
    params = init_params(key, cfg)
    x = jax.random.normal(jax.random.fold_in(key, 123),
                          (B, cfg["n_mels"], T), dtype=jnp.float32)
    out, mask = audio_encoder_forward(x, params, cfg)
    out = jax.block_until_ready(out)
    assert out.shape == (B, T // (2 ** cfg["n_enc_blocks"]), cfg["d_model"])
    assert mask is None
    assert bool(jnp.all(jnp.isfinite(out)))
    print("KERNEL_OK")
</pallas_src>

<mosaic_0001>
module attributes {stable_mosaic.version = 11 : i64} {
  func.func @conv_block_kernel(%arg0: i32, %arg1: memref<1x32x16xf32, #tpu.memory_space<vmem>>, %arg2: memref<48x32xbf16, #tpu.memory_space<vmem>>, %arg3: memref<1x32xf32, #tpu.memory_space<vmem>>, %arg4: memref<1x32xf32, #tpu.memory_space<vmem>>, %arg5: memref<1x32xf32, #tpu.memory_space<vmem>>, %arg6: memref<1x16x32xf32, #tpu.memory_space<vmem>>) attributes {dimension_semantics = [#tpu.dimension_semantics<parallel>], iteration_bounds = array<i64: 2>, scalar_prefetch = 0 : i64, scratch_operands = 0 : i64, tpu.core_type = #tpu.core_type<tc>, window_params = [{transform_indices = @transform_0, window_bounds = array<i64: 1, 32, 16>}, {pipeline_mode = #tpu.pipeline_mode<synchronous>, transform_indices = @transform_1, window_bounds = array<i64: 48, 32>}, {pipeline_mode = #tpu.pipeline_mode<synchronous>, transform_indices = @transform_2, window_bounds = array<i64: 1, 32>}, {pipeline_mode = #tpu.pipeline_mode<synchronous>, transform_indices = @transform_3, window_bounds = array<i64: 1, 32>}, {pipeline_mode = #tpu.pipeline_mode<synchronous>, transform_indices = @transform_4, window_bounds = array<i64: 1, 32>}, {transform_indices = @transform_5, window_bounds = array<i64: 1, 16, 32>}]} {
    %c0 = arith.constant 0 : index
    %c0_0 = arith.constant 0 : index
    %c0_1 = arith.constant 0 : index
    %0 = vector.load %arg1[%c0, %c0_0, %c0_1] : memref<1x32x16xf32, #tpu.memory_space<vmem>>, vector<1x32x16xf32>
    %1 = vector.shape_cast %0 : vector<1x32x16xf32> to vector<32x16xf32>
    %cst = arith.constant 0.000000e+00 : f32
    %2 = vector.broadcast %cst : f32 to vector<1x16xf32>
    %3 = tpu.concatenate %2, %1, %2 in 0 : vector<1x16xf32>, vector<32x16xf32>, vector<1x16xf32> -> vector<34x16xf32>
    %4 = vector.extract_strided_slice %3 {offsets = [0, 0], sizes = [32, 16], strides = [1, 1]} : vector<34x16xf32> to vector<32x16xf32>
    %5 = vector.extract_strided_slice %3 {offsets = [1, 0], sizes = [32, 16], strides = [1, 1]} : vector<34x16xf32> to vector<32x16xf32>
    %6 = vector.extract_strided_slice %3 {offsets = [2, 0], sizes = [32, 16], strides = [1, 1]} : vector<34x16xf32> to vector<32x16xf32>
    %7 = tpu.concatenate %4, %5, %6 in 1 : vector<32x16xf32>, vector<32x16xf32>, vector<32x16xf32> -> vector<32x48xf32>
    %8 = arith.truncf %7 : vector<32x48xf32> to vector<32x48xbf16>
    %c0_2 = arith.constant 0 : index
    %c0_3 = arith.constant 0 : index
    %9 = vector.load %arg2[%c0_2, %c0_3] : memref<48x32xbf16, #tpu.memory_space<vmem>>, vector<48x32xbf16>
    %cst_4 = arith.constant dense<0.000000e+00> : vector<32x32xf32>
    %10 = tpu.matmul %8, %9, %cst_4 {dimension_numbers = #tpu.dot_dimension_numbers<[1], [0], [0], [1], [0, 0, 1, 1], [], []>} : vector<32x48xbf16>, vector<48x32xbf16>, vector<32x32xf32> -> vector<32x32xf32>
    %c0_5 = arith.constant 0 : index
    %c0_6 = arith.constant 0 : index
    %11 = vector.load %arg3[%c0_5, %c0_6] : memref<1x32xf32, #tpu.memory_space<vmem>>, vector<1x32xf32>
    %12 = vector.broadcast %11 : vector<1x32xf32> to vector<32x32xf32>
    %13 = arith.addf %10, %12 : vector<32x32xf32>
    %c0_7 = arith.constant 0 : index
    %c0_8 = arith.constant 0 : index
    %14 = vector.load %arg4[%c0_7, %c0_8] : memref<1x32xf32, #tpu.memory_space<vmem>>, vector<1x32xf32>
    %15 = vector.broadcast %14 : vector<1x32xf32> to vector<32x32xf32>
    %16 = arith.mulf %13, %15 : vector<32x32xf32>
    %c0_9 = arith.constant 0 : index
    %c0_10 = arith.constant 0 : index
    %17 = vector.load %arg5[%c0_9, %c0_10] : memref<1x32xf32, #tpu.memory_space<vmem>>, vector<1x32xf32>
    %18 = vector.broadcast %17 : vector<1x32xf32> to vector<32x32xf32>
    %19 = arith.addf %16, %18 : vector<32x32xf32>
    %cst_11 = arith.constant 5.000000e-01 : f32
    %20 = vector.broadcast %cst_11 : f32 to vector<32x32xf32>
    %21 = arith.mulf %20, %19 : vector<32x32xf32>
    %cst_12 = arith.constant 4.471500e-02 : f32
    %22 = vector.broadcast %cst_12 : f32 to vector<32x32xf32>
    %23 = arith.mulf %22, %19 : vector<32x32xf32>
    %24 = arith.mulf %23, %19 : vector<32x32xf32>
    %25 = arith.mulf %24, %19 : vector<32x32xf32>
    %26 = arith.addf %19, %25 : vector<32x32xf32>
    %cst_13 = arith.constant 0.797884583 : f32
    %27 = vector.broadcast %cst_13 : f32 to vector<32x32xf32>
    %28 = arith.mulf %27, %26 : vector<32x32xf32>
    %29 = math.tanh %28 : vector<32x32xf32>
    %cst_14 = arith.constant 1.000000e+00 : f32
    %30 = vector.broadcast %cst_14 : f32 to vector<32x32xf32>
    %31 = arith.addf %30, %29 : vector<32x32xf32>
    %32 = arith.mulf %21, %31 : vector<32x32xf32>
    %33 = vector.shape_cast %32 : vector<32x32xf32> to vector<16x2x32xf32>
    %cst_15 = arith.constant dense<0.000000e+00> : vector<16x32xf32>
    %34 = vector.multi_reduction <add>, %33, %cst_15 [1] : vector<16x2x32xf32> to vector<16x32xf32>
    %cst_16 = arith.constant 2.000000e+00 : f32
    %35 = vector.broadcast %cst_16 : f32 to vector<16x32xf32>
    %36 = arith.divf %34, %35 : vector<16x32xf32>
    %c0_17 = arith.constant 0 : index
    %c0_18 = arith.constant 0 : index
    %c0_19 = arith.constant 0 : index
    %37 = vector.load %arg6[%c0_17, %c0_18, %c0_19] : memref<1x16x32xf32, #tpu.memory_space<vmem>>, vector<1x16x32xf32>
    %38 = vector.shape_cast %37 : vector<1x16x32xf32> to vector<16x32xf32>
    %39 = vector.shape_cast %36 : vector<16x32xf32> to vector<1x16x32xf32>
    tpu.vector_store %arg6[%c0_17, %c0_18, %c0_19], %39 {strides = array<i32>} : memref<1x16x32xf32, #tpu.memory_space<vmem>>, vector<1x16x32xf32>,
    return
  }
  func.func @transform_0(%arg0: i32) -> (i32, i32, i32) {
    %c0_i32 = arith.constant 0 : i32
    %c0_i32_0 = arith.constant 0 : i32
    %c0_i32_1 = arith.constant 0 : i32
    return %arg0, %c0_i32, %c0_i32_0 : i32, i32, i32
  }
  func.func @transform_1(%arg0: i32) -> (i32, i32) {
    %c0_i32 = arith.constant 0 : i32
    %c0_i32_0 = arith.constant 0 : i32
    %c0_i32_1 = arith.constant 0 : i32
    return %c0_i32, %c0_i32_0 : i32, i32
  }
  func.func @transform_2(%arg0: i32) -> (i32, i32) {
    %c0_i32 = arith.constant 0 : i32
    %c0_i32_0 = arith.constant 0 : i32
    %c0_i32_1 = arith.constant 0 : i32
    return %c0_i32, %c0_i32_0 : i32, i32
  }
  func.func @transform_3(%arg0: i32) -> (i32, i32) {
    %c0_i32 = arith.constant 0 : i32
    %c0_i32_0 = arith.constant 0 : i32
    %c0_i32_1 = arith.constant 0 : i32
    return %c0_i32, %c0_i32_0 : i32, i32
  }
  func.func @transform_4(%arg0: i32) -> (i32, i32) {
    %c0_i32 = arith.constant 0 : i32
    %c0_i32_0 = arith.constant 0 : i32
    %c0_i32_1 = arith.constant 0 : i32
    return %c0_i32, %c0_i32_0 : i32, i32
  }
  func.func @transform_5(%arg0: i32) -> (i32, i32, i32) {
    %c0_i32 = arith.constant 0 : i32
    %c0_i32_0 = arith.constant 0 : i32
    %c0_i32_1 = arith.constant 0 : i32
    return %arg0, %c0_i32, %c0_i32_0 : i32, i32, i32
  }
}

</mosaic_0001>

<bundles_post_ra>
// kernel: tpu_custom_call.1
= control target key start
LH: loop header
LB: loop body
LE: loop exit
PB: predicated region body
PF: predicated region fallthrough
CT: control target
= control target key end

     0   :  { %10 = vsyncpa [#allocation3], 0  ;;  %s1106_s0 = inlined_call_operand.vmem [shape: f32[2,32,16], index: 0, kind: input, shape index: {}]   ;;  %s1107_s1 = inlined_call_operand.vmem [shape: bf16[48,32], index: 1, kind: input, shape index: {}]   ;;  %s1108_s2 = inlined_call_operand.vmem [shape: f32[1,32], index: 2, kind: input, shape index: {}]   ;;  %s1109_s3 = inlined_call_operand.vmem [shape: f32[1,32], index: 3, kind: input, shape index: {}]   ;;  %s1110_s4 = inlined_call_operand.vmem [shape: f32[1,32], index: 4, kind: input, shape index: {}]   ;;  %s1111_s5 = inlined_call_operand.hbm [shape: f32[2,16,32], index: 5, kind: output, shape index: {}]  }
   0x1   :  { %12 = vsyncpa [#allocation3 + $0x1], 0  ;;  %s904_s18 = smov 0   ;;  %s906_s19 = smov 0  }
   0x2   :  { %s908_s20 = smov 0   ;;  %s910_s21 = smov 0  }
   0x3 LB: > { %s925_s22 = sadd.s32 4294967295, %s867_s21   ;;  %s694_s23 = sadd.s32 4294967294, %s867_s21   ;;  %s867_s21 = sphi %s910_s21, %s1117_s21   ;;  %s863_s20 = sphi %s908_s20, %s1116_s20   ;;  %s859_s19 = sphi %s906_s19, %s1115_s19   ;;  %s855_s18 = sphi %s904_s18, %s1114_s18  }
   0x4   : > { %s929_s24 = sadd.s32 1, %s867_s21   ;;  %s135_s25 = sadd.s32 1, %s863_s20 }
   0x5   : > { %s132_s26 = ssub.s32 %s867_s21, %s929_s24  ;;  %p145_p0 = scmp.ne.s32.totalorder %s863_s20, %s859_s19 }
   0x6   : > { %p133_p1 = scmp.eq.s32.totalorder %s132_s26, 0  ;;  %p146_p2 = scmp.eq.s32.totalorder %s925_s22, 1 }
   0x7   : > { %p151_p3 = scmp.ne.s32.totalorder %s859_s19, %s855_s18  ;;  %p152_p4 = scmp.eq.s32.totalorder %s694_s23, 1 }
   0x8   : > { %s940_s27 = scalar_select %p133_p1, %s863_s20, %s135_s25  }
   0x9   : > { %p942_p5 = por %p146_p2, %p145_p0  ;;  %p946_p6 = por %p152_p4, %p151_p3 }
   0xa   : > { %p697_p7 = scmp.ge.s32.totalorder %s867_s21, 1  ;;  %p190_p8 = scmp.lt.s32.totalorder %s867_s21, 3 }
   0xc   : > { %p191_p9 = pnand %p697_p7, %p190_p8 }
   0xd   : > { %p218_p10 = scmp.lt.s32.totalorder (!%p191_p9), %s925_s22, 1  ;;  %s869_s14 = smov (!%p191_p9), 16  }
   0xe   : > { %194 = sbr.rel (%p191_p9) target bundleno = 355 (0x163), region = 40  ;;  %s870_s15 = smov (!%p191_p9), 32  }
   0xf   : > { %s215_s8 = sand.u32 (!%p191_p9), 1, %s859_s19   ;;  %s724_s9 = sshll.u32 (!%p191_p9), %s925_s22, 4 }
  0x10   : > { %s628_s12 = scalar_lea.hbm (!%p191_p9), %s1111_s5, %s724_s9  ;;  %s617_s16 = scalar_lea.sflag (!%p191_p9), [#allocation3], %s215_s8 }
  0x11   : > { %s825_s30 = scalar_lea.hbm (!%p191_p9), %s1111_s5, 32 }
  0x13   : > { %v723_v0 = vld [vmem:[%s1107_s1 + $0x10] sm:$0xff]  ;;  %s219_s7 = scalar_select %p218_p10, %s925_s22, 1  ;;  %v722_v1 = vld [vmem:[%s1107_s1 + $0x8] sm:$0xff]  ;;  %vm232_vm0 = vcmask 1040384   ;;  %vm249_vm1 = vcmask 1046528   ;;  %vm271_vm2 = vcmask 1045504  }
  0x14   : > { %345 = vmatpush.bf16.msra.mxu0 %v723_v0  ;;  %725 = vmatpush.bf16.msra.mxu1 %v723_v0  ;;  %v721_v37 = vld [vmem:[%s1107_s1] sm:$0xff]  ;;  %vm293_vm3 = vcmask 130048   ;;  %vm298_vm4 = vcmask 261120   ;;  %vm333_vm5 = vcmask 392192   ;;  %vm439_vm6 = vcmask 254976  }
  0x15   : > { %s720_s10 = sshll.u32 %s219_s7, 5  ;;  %v792_v60 = vld [vmem:[%s1108_s2] ss:$0 sm:$0xff]  ;;  %vm591_vm8 = vcmask 1041409   ;;  %vm593_vm9 = vcmask 1042434   ;;  %vm595_vm10 = vcmask 1043459  }
  0x16   : > { %s222_s13 = scalar_lea.vmem %s1106_s0, %s720_s10  ;;  %v793_v61 = vld [vmem:[%s1109_s3] ss:$0 sm:$0xff]  ;;  %s698_s10 = sshll.u32 %s215_s8, 4  ;;  %vm597_vm11 = vcmask 1044484   ;;  %vm599_vm12 = vcmask 1045509   ;;  %vm601_vm13 = vcmask 1046534  }
  0x17   : > { %v224_v2 = vld [vmem:[%s222_s13] sm:$0xff]  ;;  %v225_v3 = vld [vmem:[%s222_s13 + $0x8] sm:$0xff]  ;;  %v226_v4 = vld [vmem:[%s222_s13 + $0x10] sm:$0xff]  ;;  %vm603_vm14 = vcmask 1047559  }
  0x18   : > { %346 = vmatpush.bf16.msra.mxu0 %v722_v1  ;;  %726 = vmatpush.bf16.msra.mxu1 %v722_v1  ;;  %v233_v5 = vrot.slane %v224_v2, 7  ;;  %v234_v6 = vrot.slane %v225_v3, 7  ;;  %v236_v7 = vrot.slane %v226_v4, 7  ;;  %v227_v8 = vld [vmem:[%s222_s13 + $0x18] sm:$0xff]  ;;  %v794_v0 = vld [vmem:[%s1110_s4] ss:$0 sm:$0xff] }
  0x19   : > { %v238_v9 = vrot.slane %v227_v8, 7  ;;  %s217_s13 = scalar_lea.vmem [#allocation2], %s698_s10 }
  0x1a   : > { %v235_v10 = vsel %vm232_vm0, %v233_v5, %v234_v6  ;;  %v237_v11 = vsel %vm232_vm0, %v234_v6, %v236_v7  ;;  %v245_v12 = vsel %vm232_vm0, 0.0, %v233_v5 }
  0x1b   : > { %v250_v13 = vrot.slane %v245_v12, 1  ;;  %v251_v14 = vrot.slane %v235_v10, 1  ;;  %v253_v15 = vrot.slane %v237_v11, 1  ;;  %v272_v16 = vrot.slane %v245_v12, 2 }
  0x1c   : > { %v273_v17 = vrot.slane %v235_v10, 2  ;;  %v275_v18 = vrot.slane %v237_v11, 2  ;;  %v239_v19 = vsel %vm232_vm0, %v236_v7, %v238_v9  ;;  %v246_v20 = vsel %vm232_vm0, %v238_v9, 0.0  ;;  %347 = vmatpush.bf16.msra.mxu0 %v721_v37  ;;  %727 = vmatpush.bf16.msra.mxu1 %v721_v37 }
  0x1d   : > { %v252_v21 = vsel %vm249_vm1, %v250_v13, %v251_v14  ;;  %v254_v22 = vsel %vm249_vm1, %v251_v14, %v253_v15  ;;  %v255_v23 = vrot.slane %v239_v19, 1  ;;  %v257_v24 = vrot.slane %v246_v20, 1 }
  0x1e   : > { %v772_v25 = vpack.i.bf16 %v254_v22, %v252_v21  ;;  %v274_v26 = vsel %vm271_vm2, %v272_v16, %v273_v17  ;;  %v276_v27 = vsel %vm271_vm2, %v273_v17, %v275_v18  ;;  %v277_v28 = vrot.slane %v239_v19, 2 }
  0x1f   : > { %v782_v29 = vpack.i.bf16 %v276_v27, %v274_v26  ;;  %v279_v30 = vrot.slane %v246_v20, 2  ;;  %v256_v31 = vsel %vm249_vm1, %v253_v15, %v255_v23  ;;  %v258_v32 = vsel %vm249_vm1, %v255_v23, %v257_v24 }
  0x20   : > { %773 = vrot.lane.b32.xlu0 %v772_v25, %s869_s14  ;;  %v278_v33 = vsel %vm271_vm2, %v275_v18, %v277_v28  ;;  %v777_v35 = vpack.i.bf16 %v258_v32, %v256_v31  ;;  %v871_v9 = vmov 2.0  }
  0x21   : > { %783 = vrot.lane.b32.xlu1 %v782_v29, %s870_s15  ;;  %v280_v34 = vsel %vm271_vm2, %v277_v28, %v279_v30  ;;  %795 = vrcp.f32 %v871_v9 }
  0x22   : > { %v787_v36 = vpack.i.bf16 %v280_v34, %v278_v33 }
  0x27   : > { %v996_v18 = vpop.eup %795 }
  0x28   : > { %778 = vrot.lane.b32.xlu0 %v777_v35, %s869_s14  ;;  %v553_v26 = vmul.f32 2.0, %v996_v18  ;;  %vm557_vm7 = vweird.f32 %v996_v18  ;;  %s629_s14 = sshll.u32 %s217_s13, 4  ;;  %s630_s14 = int_to_ptr.vmem [resolvable:$true] %s629_s14 }
  0x29   : > { %788 = vrot.lane.b32.xlu1 %v787_v36, %s870_s15  ;;  %s631_s15 = sshll.u32 %s628_s12, 4  ;;  %s632_s15 = int_to_ptr.hbm [resolvable:$true] %s631_s15 }
  0x2a   : > { %v554_v34 = vsub.f32 1.0, %v553_v26  ;;  %s819_s17 = sshra.s32 %s632_s15, 4  ;;  %s820_s17 = int_to_ptr.hbm [resolvable:$true] %s819_s17 }
  0x2b   : > { %s821_s23 = scalar_lea.hbm %s820_s17, 16  ;;  %p826_p0 = scmp.lt.s32.totalorder %s820_s17, %s1111_s5 }
  0x2c   : > { %p822_p11 = scmp.ne.s32.totalorder %s820_s17, %s821_s23  ;;  %p827_p1 = scmp.lt.s32.totalorder %s825_s30, %s821_s23 }
  0x2e   : > { %p823_p12 = pnand %p822_p11, %p942_p5  ;;  %p828_p2 = por %p827_p1, %p826_p0 }
  0x30   : > { %p824_p13 = pneg %p823_p12 }
  0x32   : > { %p829_p3 = pnand %p828_p2, %p824_p13 }
  0x92   : > { %v774_v38 = vpop.permute.xlu0 %773 }
  0x93   : > { %v776_v39 = vunpack.i.h.bf16 %v774_v38  ;;  %v775_v40 = vunpack.i.l.bf16 %v774_v38  ;;  %v784_v41 = vpop.permute.xlu1 %783 }
  0x94   : > { %v786_v42 = vunpack.i.h.bf16 %v784_v41  ;;  %v785_v43 = vunpack.i.l.bf16 %v784_v41  ;;  %v555_v41 = vmul.f32 %v996_v18, %v554_v34 }
  0x95   : > { %v295_v44 = vsel %vm293_vm3, %v235_v10, %v776_v39  ;;  %v294_v45 = vsel %vm293_vm3, %v245_v12, %v775_v40 }
  0x96   : > { %v299_v46 = vsel %vm298_vm4, %v294_v45, %v785_v43  ;;  %v300_v47 = vsel %vm298_vm4, %v295_v44, %v786_v42 }
  0x97   : > { %v303_v48 = vpack.c.bf16 %v300_v47, %v299_v46 }
  0x99   : > { %713 = vmatmul.msk.bf16.vlgmr.msra.gmra.mxu0 %vm333_vm5, %v303_v48 }
  0x9a   : > { %v779_v49 = vpop.permute.xlu0 %778 }
  0x9b   : > { %v781_v50 = vunpack.i.h.bf16 %v779_v49  ;;  %v780_v51 = vunpack.i.l.bf16 %v779_v49  ;;  %v789_v52 = vpop.permute.xlu1 %788 }
  0x9c   : > { %v791_v53 = vunpack.i.h.bf16 %v789_v52  ;;  %v790_v54 = vunpack.i.l.bf16 %v789_v52 }
  0x9d   : > { %v297_v55 = vsel %vm293_vm3, %v239_v19, %v781_v50  ;;  %v296_v56 = vsel %vm293_vm3, %v237_v11, %v780_v51 }
  0x9e   : > { %v301_v57 = vsel %vm298_vm4, %v296_v56, %v790_v54  ;;  %v302_v58 = vsel %vm298_vm4, %v297_v55, %v791_v53 }
  0x9f   : > { %v304_v59 = vpack.c.bf16 %v302_v58, %v301_v57 }
  0xa1   : > { %714 = vmatmul.msk.bf16.vlgmr.msra.gmra.mxu1 %vm333_vm5, %v304_v59 }
 0x116   : > { %v349_v62 = vpop.f32.mrf.mxu0 }
 0x117   : > { %v350_v63 = vadd.f32 %v792_v60, %v349_v62 }
 0x119   : > { %v363_v1 = vmul.f32 %v793_v61, %v350_v63 }
 0x11b   : > { %v371_v2 = vadd.f32 %v794_v0, %v363_v1 }
 0x11d   : > { %v379_v3 = vmul.f32 0.044715, %v371_v2  ;;  %v375_v35 = vmul.f32 0.5, %v371_v2 }
 0x11e   : > { %v351_v4 = vpop.f32.mrf.mxu0  ;;  %v354_v5 = vpop.f32.mrf.mxu1 }
 0x11f   : > { %v383_v6 = vmul.f32 %v379_v3, %v371_v2  ;;  %v352_v7 = vadd.f32 %v792_v60, %v351_v4  ;;  %v355_v8 = vadd.f32 %v792_v60, %v354_v5 }
 0x121   : > { %v387_v10 = vmul.f32 %v383_v6, %v371_v2  ;;  %v364_v11 = vmul.f32 %v793_v61, %v352_v7  ;;  %v365_v12 = vmul.f32 %v793_v61, %v355_v8 }
 0x123   : > { %v391_v13 = vadd.f32 %v387_v10, %v371_v2  ;;  %v372_v14 = vadd.f32 %v794_v0, %v364_v11  ;;  %v373_v15 = vadd.f32 %v794_v0, %v365_v12 }
 0x125   : > { %v395_v16 = vmul.f32 0.7978846, %v391_v13  ;;  %v380_v17 = vmul.f32 0.044715, %v372_v14  ;;  %v381_v19 = vmul.f32 0.044715, %v373_v15 }
 0x126   : > { %v356_v20 = vpop.f32.mrf.mxu1  ;;  %v376_v51 = vmul.f32 0.5, %v372_v14  ;;  %v377_v2 = vmul.f32 0.5, %v373_v15 }
 0x127   : > { %797 = vtanh.f32 %v395_v16  ;;  %v384_v21 = vmul.f32 %v380_v17, %v372_v14  ;;  %v357_v22 = vadd.f32 %v792_v60, %v356_v20  ;;  %v385_v23 = vmul.f32 %v381_v19, %v373_v15 }
 0x128   : > { %v556_v60 = vadd.f32 %v996_v18, %v555_v41 }
 0x129   : > { %v388_v24 = vmul.f32 %v384_v21, %v372_v14  ;;  %v366_v25 = vmul.f32 %v793_v61, %v357_v22  ;;  %v389_v27 = vmul.f32 %v385_v23, %v373_v15 }
 0x12a   : > { %v1015_v11 = vsel %vm557_vm7, %v996_v18, %v556_v60 }
 0x12b   : > { %v392_v28 = vadd.f32 %v388_v24, %v372_v14  ;;  %v374_v29 = vadd.f32 %v794_v0, %v366_v25  ;;  %v393_v30 = vadd.f32 %v389_v27, %v373_v15 }
 0x12d   : > { %v798_v31 = vpop.eup %797  ;;  %v396_v32 = vmul.f32 0.7978846, %v392_v28  ;;  %v382_v33 = vmul.f32 0.044715, %v374_v29  ;;  %v397_v37 = vmul.f32 0.7978846, %v393_v30 }
 0x12e   : > { %v403_v36 = vadd.f32 1.0, %v798_v31  ;;  %v378_v15 = vmul.f32 0.5, %v374_v29 }
 0x12f   : > { %799 = vtanh.f32 %v396_v32  ;;  %v386_v38 = vmul.f32 %v382_v33, %v374_v29 }
 0x130   : > { %v407_v39 = vmul.f32 %v403_v36, %v375_v35  ;;  %801 = vtanh.f32 %v397_v37 }
 0x131   : > { %v390_v40 = vmul.f32 %v386_v38, %v374_v29 }
 0x132   : > { %v415_v42 = vrot.slane %v407_v39, 2  ;;  %v416_v43 = vrot.slane %v407_v39, 4  ;;  %v417_v44 = vrot.slane %v407_v39, 6  ;;  %v440_v45 = vsel %vm439_vm6, %v407_v39, 0.0 }
 0x133   : > { %v441_v46 = vrot.slane %v440_v45, 4  ;;  %v394_v47 = vadd.f32 %v390_v40, %v374_v29 }
 0x134   : > { %v447_v48 = vsel %vm439_vm6, %v415_v42, 0.0  ;;  %v454_v49 = vsel %vm439_vm6, %v416_v43, 0.0  ;;  %v461_v50 = vsel %vm439_vm6, %v417_v44, 0.0 }
 0x135   : > { %v800_v52 = vpop.eup %799  ;;  %v442_v53 = vadd.f32 %v441_v46, %v440_v45  ;;  %v448_v54 = vrot.slane %v447_v48, 4  ;;  %v455_v55 = vrot.slane %v454_v49, 4  ;;  %v462_v56 = vrot.slane %v461_v50, 4 }
 0x136   : > { %v802_v57 = vpop.eup %801  ;;  %v404_v58 = vadd.f32 1.0, %v800_v52  ;;  %v398_v59 = vmul.f32 0.7978846, %v394_v47 }
 0x137   : > { %v443_v61 = vrot.slane %v442_v53, 2  ;;  %v449_v62 = vadd.f32 %v448_v54, %v447_v48  ;;  %v456_v63 = vadd.f32 %v455_v55, %v454_v49  ;;  %v463_v0 = vadd.f32 %v462_v56, %v461_v50 }
 0x138   : > { %v1006_v1 = vmul.f32 %v404_v58, %v376_v51  ;;  %v405_v3 = vadd.f32 1.0, %v802_v57  ;;  %803 = vtanh.f32 %v398_v59 }
 0x139   : > { %v444_v4 = vadd.f32 %v443_v61, %v442_v53  ;;  %v450_v5 = vrot.slane %v449_v62, 2  ;;  %v457_v6 = vrot.slane %v456_v63, 2  ;;  %v464_v7 = vrot.slane %v463_v0, 2 }
 0x13a   : > { %v418_v8 = vrot.slane %v1006_v1, 2  ;;  %v419_v9 = vrot.slane %v1006_v1, 4  ;;  %v468_v10 = vsel %vm439_vm6, %v1006_v1, 0.0  ;;  %v420_v17 = vrot.slane %v1006_v1, 6 }
 0x13b   : > { %v445_v12 = vrot.slane %v444_v4, 1  ;;  %v451_v13 = vadd.f32 %v450_v5, %v449_v62  ;;  %v469_v14 = vrot.slane %v468_v10, 4  ;;  %v458_v16 = vadd.f32 %v457_v6, %v456_v63 }
 0x13c   : > { %v475_v19 = vsel %vm439_vm6, %v418_v8, 0.0  ;;  %v409_v20 = vmul.f32 %v405_v3, %v377_v2  ;;  %v465_v23 = vadd.f32 %v464_v7, %v463_v0  ;;  %v482_v24 = vsel %vm439_vm6, %v419_v9, 0.0 }
 0x13d   : > { %v452_v21 = vrot.slane %v451_v13, 1  ;;  %v470_v22 = vadd.f32 %v469_v14, %v468_v10  ;;  %v1021_v30 = vadd.f32 %v445_v12, %v444_v4  ;;  %v459_v36 = vrot.slane %v458_v16, 1 }
 0x13e   : > { %v804_v25 = vpop.eup %803  ;;  %v421_v26 = vrot.slane %v409_v20, 2  ;;  %v422_v27 = vrot.slane %v409_v20, 4  ;;  %v423_v18 = vrot.slane %v409_v20, 6  ;;  %v496_v28 = vsel %vm439_vm6, %v409_v20, 0.0 }
 0x13f   : > { %v471_v29 = vrot.slane %v470_v22, 2  ;;  %v497_v31 = vrot.slane %v496_v28, 4  ;;  %v406_v32 = vadd.f32 1.0, %v804_v25  ;;  %v476_v41 = vrot.slane %v475_v19, 4 }
 0x140   : > { %v503_v33 = vsel %vm439_vm6, %v421_v26, 0.0  ;;  %v510_v34 = vsel %vm439_vm6, %v422_v27, 0.0  ;;  %v517_v35 = vsel %vm439_vm6, %v423_v18, 0.0  ;;  %v1026_v43 = vadd.f32 %v452_v21, %v451_v13 }
 0x141   : > { %v498_v37 = vadd.f32 %v497_v31, %v496_v28  ;;  %v504_v38 = vrot.slane %v503_v33, 4  ;;  %v511_v39 = vrot.slane %v510_v34, 4  ;;  %v518_v40 = vrot.slane %v517_v35, 4 }
 0x142   : > { %v410_v42 = vmul.f32 %v406_v32, %v378_v15  ;;  %v472_v44 = vadd.f32 %v471_v29, %v470_v22  ;;  %v1029_v51 = vadd.f32 %v459_v36, %v458_v16  ;;  %v466_v52 = vrot.slane %v465_v23, 1 }
 0x143   : > { %v499_v45 = vrot.slane %v498_v37, 2  ;;  %v505_v46 = vadd.f32 %v504_v38, %v503_v33  ;;  %v512_v47 = vadd.f32 %v511_v39, %v510_v34  ;;  %v519_v48 = vadd.f32 %v518_v40, %v517_v35 }
 0x144   : > { %v424_v49 = vrot.slane %v410_v42, 2  ;;  %v524_v50 = vsel %vm439_vm6, %v410_v42, 0.0  ;;  %v425_v56 = vrot.slane %v410_v42, 4  ;;  %v473_v60 = vrot.slane %v472_v44, 1 }
 0x145   : > { %v500_v53 = vadd.f32 %v499_v45, %v498_v37  ;;  %v506_v54 = vrot.slane %v505_v46, 2  ;;  %v513_v55 = vrot.slane %v512_v47, 2  ;;  %v520_v57 = vrot.slane %v519_v48, 2 }
 0x146   : > { %v525_v58 = vrot.slane %v524_v50, 4  ;;  %v531_v59 = vsel %vm439_vm6, %v424_v49, 0.0  ;;  %v426_v1 = vrot.slane %v410_v42, 6  ;;  %v477_v3 = vadd.f32 %v476_v41, %v475_v19 }
 0x147   : > { %v501_v61 = vrot.slane %v500_v53, 1  ;;  %v507_v62 = vadd.f32 %v506_v54, %v505_v46  ;;  %v514_v63 = vadd.f32 %v513_v55, %v512_v47  ;;  %v532_v0 = vrot.slane %v531_v59, 4 }
 0x148   : > { %v526_v2 = vadd.f32 %v525_v58, %v524_v50  ;;  %v483_v4 = vrot.slane %v482_v24, 4  ;;  %v467_v6 = vadd.f32 %v466_v52, %v465_v23  ;;  %v474_v7 = vadd.f32 %v473_v60, %v472_v44 }
 0x149   : > { %v502_v5 = vadd.f32 %v501_v61, %v500_v53  ;;  %v489_v8 = vsel %vm439_vm6, %v420_v17, 0.0  ;;  %v478_v10 = vrot.slane %v477_v3, 2  ;;  %v508_v14 = vrot.slane %v507_v62, 1 }
 0x14a   : > { %v527_v9 = vrot.slane %v526_v2, 2  ;;  %v484_v12 = vadd.f32 %v483_v4, %v482_v24  ;;  %v490_v13 = vrot.slane %v489_v8, 4  ;;  %v515_v15 = vrot.slane %v514_v63, 1 }
 0x14b   : > { %v521_v16 = vadd.f32 %v520_v57, %v519_v48  ;;  %v533_v20 = vadd.f32 %v532_v0, %v531_v59  ;;  %v479_v21 = vadd.f32 %v478_v10, %v477_v3  ;;  %v538_v23 = vsel %vm439_vm6, %v425_v56, 0.0 }
 0x14c   : > { %v485_v22 = vrot.slane %v484_v12, 2  ;;  %v491_v25 = vadd.f32 %v490_v13, %v489_v8  ;;  %v528_v26 = vadd.f32 %v527_v9, %v526_v2  ;;  %v545_v18 = vsel %vm439_vm6, %v426_v1, 0.0 }
 0x14d   : > { %v522_v19 = vrot.slane %v521_v16, 1  ;;  %v534_v27 = vrot.slane %v533_v20, 2  ;;  %v480_v17 = vrot.slane %v479_v21, 1  ;;  %v509_v31 = vadd.f32 %v508_v14, %v507_v62 }
 0x14e   : > { %v486_v28 = vadd.f32 %v485_v22, %v484_v12  ;;  %v492_v24 = vrot.slane %v491_v25, 2  ;;  %v529_v29 = vrot.slane %v528_v26, 1  ;;  %v539_v33 = vrot.slane %v538_v23, 4 }
 0x14f   : > { %v535_v32 = vadd.f32 %v534_v27, %v533_v20  ;;  %v546_v34 = vrot.slane %v545_v18, 4  ;;  %v516_v37 = vadd.f32 %v515_v15, %v514_v63  ;;  %v523_v38 = vadd.f32 %v522_v19, %v521_v16 }
 0x150   : > { %v487_v35 = vrot.slane %v486_v28, 1  ;;  %v493_v36 = vadd.f32 %v492_v24, %v491_v25  ;;  %v481_v39 = vadd.f32 %v480_v17, %v479_v21  ;;  %v540_v41 = vadd.f32 %v539_v33, %v538_v23 }
 0x151   : > { %v536_v40 = vrot.slane %v535_v32, 1  ;;  %v547_v42 = vadd.f32 %v546_v34, %v545_v18  ;;  %v530_v46 = vadd.f32 %v529_v29, %v528_v26  ;;  %v559_v47 = vmul.f32 %v1015_v11, %v1021_v30 }
 0x152   : > { %v488_v44 = vadd.f32 %v487_v35, %v486_v28  ;;  %v494_v45 = vrot.slane %v493_v36, 1  ;;  %v541_v48 = vrot.slane %v540_v41, 2  ;;  %v560_v50 = vmul.f32 %v1015_v11, %v1026_v43 }
 0x153   : > { %v548_v49 = vrot.slane %v547_v42, 2  ;;  %v561_v52 = vmul.f32 %v1015_v11, %v1029_v51  ;;  %v537_v54 = vadd.f32 %v536_v40, %v535_v32  ;;  %v562_v55 = vmul.f32 %v1015_v11, %v467_v6 }
 0x154   : > { %v495_v53 = vadd.f32 %v494_v45, %v493_v36  ;;  %v563_v56 = vmul.f32 %v1015_v11, %v474_v7  ;;  %v542_v57 = vadd.f32 %v541_v48, %v540_v41  ;;  %v564_v30 = vmul.f32 %v1015_v11, %v481_v39 }
 0x155   : > { %v549_v58 = vadd.f32 %v548_v49, %v547_v42  ;;  %v565_v59 = vmul.f32 %v1015_v11, %v488_v44  ;;  %v567_v43 = vmul.f32 %v1015_v11, %v502_v5  ;;  %v568_v60 = vmul.f32 %v1015_v11, %v509_v31 }
 0x156   : > { %v569_v51 = vmul.f32 %v1015_v11, %v516_v37  ;;  %v570_v61 = vmul.f32 %v1015_v11, %v523_v38  ;;  %v543_v62 = vrot.slane %v542_v57, 1  ;;  %v571_v0 = vmul.f32 %v1015_v11, %v530_v46 }
 0x157   : > { %v550_v63 = vrot.slane %v549_v58, 1  ;;  %v592_v1 = vsel %vm591_vm8, %v560_v50, %v559_v47  ;;  %v572_v4 = vmul.f32 %v1015_v11, %v537_v54  ;;  %v605_v8 = vsel %vm591_vm8, %v568_v60, %v567_v43 }
 0x158   : > { %v594_v2 = vsel %vm593_vm9, %v561_v52, %v592_v1  ;;  %v544_v3 = vadd.f32 %v543_v62, %v542_v57  ;;  %v566_v9 = vmul.f32 %v1015_v11, %v495_v53  ;;  %v606_v13 = vsel %vm593_vm9, %v569_v51, %v605_v8 }
 0x159   : > { %v596_v5 = vsel %vm595_vm10, %v562_v55, %v594_v2  ;;  %v551_v6 = vadd.f32 %v550_v63, %v549_v58  ;;  %v607_v15 = vsel %vm595_vm10, %v570_v61, %v606_v13 }
 0x15a   : > { %v598_v7 = vsel %vm597_vm11, %v563_v56, %v596_v5  ;;  %v573_v10 = vmul.f32 %v1015_v11, %v544_v3  ;;  %v608_v20 = vsel %vm597_vm11, %v571_v0, %v607_v15 }
 0x15b   : > { %v600_v12 = vsel %vm599_vm12, %v564_v30, %v598_v7  ;;  %v574_v21 = vmul.f32 %v1015_v11, %v551_v6  ;;  %v609_v22 = vsel %vm599_vm12, %v572_v4, %v608_v20 }
 0x15c   : > { %v602_v14 = vsel %vm601_vm13, %v565_v59, %v600_v12  ;;  %v610_v25 = vsel %vm601_vm13, %v573_v10, %v609_v22 }
 0x15d   : > { %v604_v16 = vsel %vm603_vm14, %v566_v9, %v602_v14  ;;  %v611_v26 = vsel %vm603_vm14, %v574_v21, %v610_v25 }
 0x15e   : > { %614 = vst.msk [vmem:[%s217_s13] sm:$0xff] %vm298_vm4, %v604_v16 }
 0x15f   : > { %615 = vst.msk [vmem:[%s217_s13 + $0x8] sm:$0xff] %vm298_vm4, %v611_v26 }
 0x160   : > { %832 = shalt.err (!%p829_p3)
}
 0x161   : > { %s872_s8 = smov 128   ;;  %s873_s9 = smov 8  }
 0x162   : > { %728 = dma.vmem_to_hbm [thread:$0]  (%p942_p5), %s630_s14, 256, %s632_s15, %s617_s16, %s872_s8, %s872_s8, %s873_s9  }
 0x163 PF: > { %p734_p4 = scmp.ge.s32.totalorder %s867_s21, 2  ;;  %s646_s10 = sand.u32 1, %s855_s18  }
 0x164   : > { %s647_s22 = scalar_lea.sflag [#allocation3], %s646_s10 }
 0x165   : > { %p731_p7 = pnand %p734_p4, %p946_p6 }
 0x167   : > { %p732_p8 = pneg %p731_p7 }
 0x169   : > { %850 = dma.done.wait (%p732_p8), %s647_s22, 256  }
 0x16a   : > { %852 = vsyncadd (%p732_p8), %s647_s22, 4294967040  ;;  %p15_p9 = scmp.ge.s32.totalorder %s929_s24, 4   ;;  %s1114_s18 = smov %s859_s19 }
 0x16b   : > { %s1115_s19 = smov %s863_s20  ;;  %s1116_s20 = smov %s940_s27 }
 0x16c   : > { %s1117_s21 = smov %s929_s24  ;;  %17 = sbr.rel (!%p15_p9) target bundleno = 3 (0x3), region = 75 }
 0x171   :  { %653 = vsyncpa [#allocation3], 1 }
 0x172   :  { %655 = vsyncpa [#allocation3 + $0x1], 1 }

</bundles_post_ra>
